<compile_context>
chip_gen: v7x
topology: tpu7x:2x2x1
jax: 0.10.0
libtpu: 0.0.40
codegen_flags: <defaults>
</compile_context>

<pallas_src>
import jax
import jax.numpy as jnp
from jax.experimental import pallas as pl
from jax.experimental.pallas import tpu as pltpu


def gpnet_kernel(x_ref,
                 w11_ref, b11_ref, w12_ref, b12_ref, w13_ref, b13_ref,
                 w14_ref, b14_ref, w15_ref, b15_ref,
                 w21_ref, b21_ref, w22_ref, b22_ref, w23_ref, b23_ref,
                 o_ref):
    # Transposed layout: x is (2, T) -> activations are (features, T).
    x = x_ref[...].astype(jnp.float32)
    x0 = x[0:1, :]                       # (1, T)
    x1 = x[1:2, :]                       # (1, T)

    def sigmoid(z):
        # Single-EUP-op sigmoid: sigmoid(z) == 0.5 * (tanh(0.5*z) + 1).
        return 0.5 * (jnp.tanh(0.5 * z) + 1.0)

    # ---------------- mynet1 ----------------
    w11 = w11_ref[...]                   # (40, 2)
    # K=2 layer as two broadcast FMAs on the VPU (MXU would be <2% utilized).
    h = jnp.tanh(w11[:, 0:1] * x0 + w11[:, 1:2] * x1 + b11_ref[...])   # (40, T)
    h = jnp.tanh(jnp.dot(w12_ref[...], h,
                         preferred_element_type=jnp.float32) + b12_ref[...])  # (20, T)
    h = jnp.tanh(jnp.dot(w13_ref[...], h,
                         preferred_element_type=jnp.float32) + b13_ref[...])  # (10, T)
    h = sigmoid(jnp.dot(w14_ref[...], h,
                        preferred_element_type=jnp.float32) + b14_ref[...])   # (5, T)
    h11 = jnp.dot(w15_ref[...], h,
                  preferred_element_type=jnp.float32) + b15_ref[...]          # (1, T)

    # ---------------- mynet2 ----------------
    w21 = w21_ref[...]                   # (20, 2)
    g = jnp.tanh(w21[:, 0:1] * x0 + w21[:, 1:2] * x1 + b21_ref[...])   # (20, T)
    g = jnp.tanh(jnp.dot(w22_ref[...], g,
                         preferred_element_type=jnp.float32) + b22_ref[...])  # (10, T)
    h12 = jnp.dot(w23_ref[...], g,
                  preferred_element_type=jnp.float32) + b23_ref[...]          # (1, T)

    # Lane-dense (2, T) output: row 0 = mynet1, row 1 = mynet2.
    o_ref[...] = jnp.concatenate([h11, h12], axis=0).astype(o_ref.dtype)


def gpnet2_2_2_forward(x_train, params, *, col_tile=512):
    """out = cat(mynet1(x), mynet2(x), dim=1), computed with a Pallas kernel
    in a batch-on-lanes layout, tiled over the batch dimension."""
    (w11, b11, w12, b12, w13, b13, w14, b14, w15, b15,
     w21, b21, w22, b22, w23, b23) = params
    N, F = x_train.shape
    assert F == 2

    # Lane tile: multiple of 128, no larger than needed for small N.
    n_pad128 = ((N + 127) // 128) * 128
    tile = min(((col_tile + 127) // 128) * 128, n_pad128)
    grid_n = pl.cdiv(N, tile)
    n_pad = grid_n * tile

    x_t = x_train.T.astype(jnp.float32)              # (2, N), batch on lanes
    if n_pad != N:
        x_t = jnp.pad(x_t, ((0, 0), (0, n_pad - N)))

    weights = (w11, b11, w12, b12, w13, b13, w14, b14, w15, b15,
               w21, b21, w22, b22, w23, b23)
    const = lambda i: (0, 0)                         # weights/biases untiled

    grid_spec = pltpu.PrefetchScalarGridSpec(
        num_scalar_prefetch=0,
        grid=(grid_n,),
        in_specs=[pl.BlockSpec((2, tile), lambda i: (0, i))]
                 + [pl.BlockSpec(w.shape, const) for w in weights],
        out_specs=pl.BlockSpec((2, tile), lambda i: (0, i)),
    )

    out_t = pl.pallas_call(
        gpnet_kernel,
        out_shape=jax.ShapeDtypeStruct((2, n_pad), jnp.float32),
        grid_spec=grid_spec,
        compiler_params=pltpu.CompilerParams(
            dimension_semantics=("parallel",)),
    )(x_t, *weights)

    return out_t[:, :N].T                            # (N, 2), matches torch.cat


def init_params(key):
    """Deterministic init mimicking PyTorch Linear:
    weights [out, in], biases [out, 1], uniform(-1/sqrt(in), 1/sqrt(in))."""
    dims = [(2, 40), (40, 20), (20, 10), (10, 5), (5, 1),   # mynet1
            (2, 20), (20, 10), (10, 1)]                     # mynet2
    params = []
    keys = jax.random.split(key, len(dims) * 2)
    for idx, (fan_in, fan_out) in enumerate(dims):
        bound = 1.0 / (fan_in ** 0.5)
        w = jax.random.uniform(keys[2 * idx], (fan_out, fan_in),
                               minval=-bound, maxval=bound, dtype=jnp.float32)
        b = jax.random.uniform(keys[2 * idx + 1], (fan_out, 1),
                               minval=-bound, maxval=bound, dtype=jnp.float32)
        params += [w, b]
    return tuple(params)


def reference_forward(x, params):
    (w11, b11, w12, b12, w13, b13, w14, b14, w15, b15,
     w21, b21, w22, b22, w23, b23) = params

    def lin(h, w, b):
        return h @ w.T + b.T

    h = jnp.tanh(lin(x, w11, b11))
    h = jnp.tanh(lin(h, w12, b12))
    h = jnp.tanh(lin(h, w13, b13))
    h = jax.nn.sigmoid(lin(h, w14, b14))
    h11 = lin(h, w15, b15)

    g = jnp.tanh(lin(x, w21, b21))
    g = jnp.tanh(lin(g, w22, b22))
    h12 = lin(g, w23, b23)

    return jnp.concatenate([h11, h12], axis=1)


if __name__ == "__main__":
    key = jax.random.PRNGKey(0)
    k_x, k_p = jax.random.split(key)

    N = 1000  # non-multiple of tile to exercise the padded tail path
    x_train = jax.random.normal(k_x, (N, 2), dtype=jnp.float32)
    params = init_params(k_p)

    out = gpnet2_2_2_forward(x_train, params, col_tile=512)
    out = jax.block_until_ready(out)

    ref = reference_forward(x_train, params)
    assert out.shape == (N, 2)
    assert jnp.allclose(out, ref, atol=1e-4, rtol=1e-4), "mismatch vs reference"

    print("KERNEL_OK")
</pallas_src>

<mosaic_0001>
module attributes {stable_mosaic.version = 11 : i64} {
  func.func @gpnet_kernel(%arg0: i32, %arg1: memref<2x512xf32, #tpu.memory_space<vmem>>, %arg2: memref<40x2xf32, #tpu.memory_space<vmem>>, %arg3: memref<40x1xf32, #tpu.memory_space<vmem>>, %arg4: memref<20x40xf32, #tpu.memory_space<vmem>>, %arg5: memref<20x1xf32, #tpu.memory_space<vmem>>, %arg6: memref<10x20xf32, #tpu.memory_space<vmem>>, %arg7: memref<10x1xf32, #tpu.memory_space<vmem>>, %arg8: memref<5x10xf32, #tpu.memory_space<vmem>>, %arg9: memref<5x1xf32, #tpu.memory_space<vmem>>, %arg10: memref<1x5xf32, #tpu.memory_space<vmem>>, %arg11: memref<1x1xf32, #tpu.memory_space<vmem>>, %arg12: memref<20x2xf32, #tpu.memory_space<vmem>>, %arg13: memref<20x1xf32, #tpu.memory_space<vmem>>, %arg14: memref<10x20xf32, #tpu.memory_space<vmem>>, %arg15: memref<10x1xf32, #tpu.memory_space<vmem>>, %arg16: memref<1x10xf32, #tpu.memory_space<vmem>>, %arg17: memref<1x1xf32, #tpu.memory_space<vmem>>, %arg18: memref<2x512xf32, #tpu.memory_space<vmem>>) attributes {dimension_semantics = [#tpu.dimension_semantics<parallel>], iteration_bounds = array<i64: 2>, scalar_prefetch = 0 : i64, scratch_operands = 0 : i64, tpu.core_type = #tpu.core_type<tc>, window_params = [{transform_indices = @transform_0, window_bounds = array<i64: 2, 512>}, {pipeline_mode = #tpu.pipeline_mode<synchronous>, transform_indices = @transform_1, window_bounds = array<i64: 40, 2>}, {pipeline_mode = #tpu.pipeline_mode<synchronous>, transform_indices = @transform_2, window_bounds = array<i64: 40, 1>}, {pipeline_mode = #tpu.pipeline_mode<synchronous>, transform_indices = @transform_3, window_bounds = array<i64: 20, 40>}, {pipeline_mode = #tpu.pipeline_mode<synchronous>, transform_indices = @transform_4, window_bounds = array<i64: 20, 1>}, {pipeline_mode = #tpu.pipeline_mode<synchronous>, transform_indices = @transform_5, window_bounds = array<i64: 10, 20>}, {pipeline_mode = #tpu.pipeline_mode<synchronous>, transform_indices = @transform_6, window_bounds = array<i64: 10, 1>}, {pipeline_mode = #tpu.pipeline_mode<synchronous>, transform_indices = @transform_7, window_bounds = array<i64: 5, 10>}, {pipeline_mode = #tpu.pipeline_mode<synchronous>, transform_indices = @transform_8, window_bounds = array<i64: 5, 1>}, {pipeline_mode = #tpu.pipeline_mode<synchronous>, transform_indices = @transform_9, window_bounds = array<i64: 1, 5>}, {pipeline_mode = #tpu.pipeline_mode<synchronous>, transform_indices = @transform_10, window_bounds = array<i64: 1, 1>}, {pipeline_mode = #tpu.pipeline_mode<synchronous>, transform_indices = @transform_11, window_bounds = array<i64: 20, 2>}, {pipeline_mode = #tpu.pipeline_mode<synchronous>, transform_indices = @transform_12, window_bounds = array<i64: 20, 1>}, {pipeline_mode = #tpu.pipeline_mode<synchronous>, transform_indices = @transform_13, window_bounds = array<i64: 10, 20>}, {pipeline_mode = #tpu.pipeline_mode<synchronous>, transform_indices = @transform_14, window_bounds = array<i64: 10, 1>}, {pipeline_mode = #tpu.pipeline_mode<synchronous>, transform_indices = @transform_15, window_bounds = array<i64: 1, 10>}, {pipeline_mode = #tpu.pipeline_mode<synchronous>, transform_indices = @transform_16, window_bounds = array<i64: 1, 1>}, {transform_indices = @transform_17, window_bounds = array<i64: 2, 512>}]} {
    %c0 = arith.constant 0 : index
    %c0_0 = arith.constant 0 : index
    %0 = vector.load %arg1[%c0, %c0_0] : memref<2x512xf32, #tpu.memory_space<vmem>>, vector<2x512xf32>
    %1 = vector.extract_strided_slice %0 {offsets = [0, 0], sizes = [1, 512], strides = [1, 1]} : vector<2x512xf32> to vector<1x512xf32>
    %2 = vector.extract_strided_slice %0 {offsets = [1, 0], sizes = [1, 512], strides = [1, 1]} : vector<2x512xf32> to vector<1x512xf32>
    %c0_1 = arith.constant 0 : index
    %c0_2 = arith.constant 0 : index
    %3 = vector.load %arg2[%c0_1, %c0_2] : memref<40x2xf32, #tpu.memory_space<vmem>>, vector<40x2xf32>
    %4 = vector.extract_strided_slice %3 {offsets = [0, 0], sizes = [40, 1], strides = [1, 1]} : vector<40x2xf32> to vector<40x1xf32>
    %5 = vector.broadcast %4 : vector<40x1xf32> to vector<40x512xf32>
    %6 = vector.broadcast %1 : vector<1x512xf32> to vector<40x512xf32>
    %7 = arith.mulf %5, %6 : vector<40x512xf32>
    %8 = vector.extract_strided_slice %3 {offsets = [0, 1], sizes = [40, 1], strides = [1, 1]} : vector<40x2xf32> to vector<40x1xf32>
    %9 = vector.broadcast %8 : vector<40x1xf32> to vector<40x512xf32>
    %10 = vector.broadcast %2 : vector<1x512xf32> to vector<40x512xf32>
    %11 = arith.mulf %9, %10 : vector<40x512xf32>
    %12 = arith.addf %7, %11 : vector<40x512xf32>
    %c0_3 = arith.constant 0 : index
    %c0_4 = arith.constant 0 : index
    %13 = vector.load %arg3[%c0_3, %c0_4] : memref<40x1xf32, #tpu.memory_space<vmem>>, vector<40x1xf32>
    %14 = vector.broadcast %13 : vector<40x1xf32> to vector<40x512xf32>
    %15 = arith.addf %12, %14 : vector<40x512xf32>
    %16 = math.tanh %15 : vector<40x512xf32>
    %c0_5 = arith.constant 0 : index
    %c0_6 = arith.constant 0 : index
    %17 = vector.load %arg4[%c0_5, %c0_6] : memref<20x40xf32, #tpu.memory_space<vmem>>, vector<20x40xf32>
    %cst = arith.constant dense<0.000000e+00> : vector<20x512xf32>
    %18 = tpu.matmul %17, %16, %cst {dimension_numbers = #tpu.dot_dimension_numbers<[1], [0], [0], [1], [0, 0, 1, 1], [], []>} : vector<20x40xf32>, vector<40x512xf32>, vector<20x512xf32> -> vector<20x512xf32>
    %c0_7 = arith.constant 0 : index
    %c0_8 = arith.constant 0 : index
    %19 = vector.load %arg5[%c0_7, %c0_8] : memref<20x1xf32, #tpu.memory_space<vmem>>, vector<20x1xf32>
    %20 = vector.broadcast %19 : vector<20x1xf32> to vector<20x512xf32>
    %21 = arith.addf %18, %20 : vector<20x512xf32>
    %22 = math.tanh %21 : vector<20x512xf32>
    %c0_9 = arith.constant 0 : index
    %c0_10 = arith.constant 0 : index
    %23 = vector.load %arg6[%c0_9, %c0_10] : memref<10x20xf32, #tpu.memory_space<vmem>>, vector<10x20xf32>
    %cst_11 = arith.constant dense<0.000000e+00> : vector<10x512xf32>
    %24 = tpu.matmul %23, %22, %cst_11 {dimension_numbers = #tpu.dot_dimension_numbers<[1], [0], [0], [1], [0, 0, 1, 1], [], []>} : vector<10x20xf32>, vector<20x512xf32>, vector<10x512xf32> -> vector<10x512xf32>
    %c0_12 = arith.constant 0 : index
    %c0_13 = arith.constant 0 : index
    %25 = vector.load %arg7[%c0_12, %c0_13] : memref<10x1xf32, #tpu.memory_space<vmem>>, vector<10x1xf32>
    %26 = vector.broadcast %25 : vector<10x1xf32> to vector<10x512xf32>
    %27 = arith.addf %24, %26 : vector<10x512xf32>
    %28 = math.tanh %27 : vector<10x512xf32>
    %c0_14 = arith.constant 0 : index
    %c0_15 = arith.constant 0 : index
    %29 = vector.load %arg8[%c0_14, %c0_15] : memref<5x10xf32, #tpu.memory_space<vmem>>, vector<5x10xf32>
    %cst_16 = arith.constant dense<0.000000e+00> : vector<5x512xf32>
    %30 = tpu.matmul %29, %28, %cst_16 {dimension_numbers = #tpu.dot_dimension_numbers<[1], [0], [0], [1], [0, 0, 1, 1], [], []>} : vector<5x10xf32>, vector<10x512xf32>, vector<5x512xf32> -> vector<5x512xf32>
    %c0_17 = arith.constant 0 : index
    %c0_18 = arith.constant 0 : index
    %31 = vector.load %arg9[%c0_17, %c0_18] : memref<5x1xf32, #tpu.memory_space<vmem>>, vector<5x1xf32>
    %32 = vector.broadcast %31 : vector<5x1xf32> to vector<5x512xf32>
    %33 = arith.addf %30, %32 : vector<5x512xf32>
    %cst_19 = arith.constant 5.000000e-01 : f32
    %34 = vector.broadcast %cst_19 : f32 to vector<5x512xf32>
    %35 = arith.mulf %34, %33 : vector<5x512xf32>
    %36 = math.tanh %35 : vector<5x512xf32>
    %cst_20 = arith.constant 1.000000e+00 : f32
    %37 = vector.broadcast %cst_20 : f32 to vector<5x512xf32>
    %38 = arith.addf %36, %37 : vector<5x512xf32>
    %cst_21 = arith.constant 5.000000e-01 : f32
    %39 = vector.broadcast %cst_21 : f32 to vector<5x512xf32>
    %40 = arith.mulf %39, %38 : vector<5x512xf32>
    %c0_22 = arith.constant 0 : index
    %c0_23 = arith.constant 0 : index
    %41 = vector.load %arg10[%c0_22, %c0_23] : memref<1x5xf32, #tpu.memory_space<vmem>>, vector<1x5xf32>
    %cst_24 = arith.constant dense<0.000000e+00> : vector<1x512xf32>
    %42 = tpu.matmul %41, %40, %cst_24 {dimension_numbers = #tpu.dot_dimension_numbers<[1], [0], [0], [1], [0, 0, 1, 1], [], []>} : vector<1x5xf32>, vector<5x512xf32>, vector<1x512xf32> -> vector<1x512xf32>
    %c0_25 = arith.constant 0 : index
    %c0_26 = arith.constant 0 : index
    %43 = vector.load %arg11[%c0_25, %c0_26] : memref<1x1xf32, #tpu.memory_space<vmem>>, vector<1x1xf32>
    %44 = vector.broadcast %43 : vector<1x1xf32> to vector<1x512xf32>
    %45 = arith.addf %42, %44 : vector<1x512xf32>
    %c0_27 = arith.constant 0 : index
    %c0_28 = arith.constant 0 : index
    %46 = vector.load %arg12[%c0_27, %c0_28] : memref<20x2xf32, #tpu.memory_space<vmem>>, vector<20x2xf32>
    %47 = vector.extract_strided_slice %46 {offsets = [0, 0], sizes = [20, 1], strides = [1, 1]} : vector<20x2xf32> to vector<20x1xf32>
    %48 = vector.broadcast %47 : vector<20x1xf32> to vector<20x512xf32>
    %49 = vector.broadcast %1 : vector<1x512xf32> to vector<20x512xf32>
    %50 = arith.mulf %48, %49 : vector<20x512xf32>
    %51 = vector.extract_strided_slice %46 {offsets = [0, 1], sizes = [20, 1], strides = [1, 1]} : vector<20x2xf32> to vector<20x1xf32>
    %52 = vector.broadcast %51 : vector<20x1xf32> to vector<20x512xf32>
    %53 = vector.broadcast %2 : vector<1x512xf32> to vector<20x512xf32>
    %54 = arith.mulf %52, %53 : vector<20x512xf32>
    %55 = arith.addf %50, %54 : vector<20x512xf32>
    %c0_29 = arith.constant 0 : index
    %c0_30 = arith.constant 0 : index
    %56 = vector.load %arg13[%c0_29, %c0_30] : memref<20x1xf32, #tpu.memory_space<vmem>>, vector<20x1xf32>
    %57 = vector.broadcast %56 : vector<20x1xf32> to vector<20x512xf32>
    %58 = arith.addf %55, %57 : vector<20x512xf32>
    %59 = math.tanh %58 : vector<20x512xf32>
    %c0_31 = arith.constant 0 : index
    %c0_32 = arith.constant 0 : index
    %60 = vector.load %arg14[%c0_31, %c0_32] : memref<10x20xf32, #tpu.memory_space<vmem>>, vector<10x20xf32>
    %cst_33 = arith.constant dense<0.000000e+00> : vector<10x512xf32>
    %61 = tpu.matmul %60, %59, %cst_33 {dimension_numbers = #tpu.dot_dimension_numbers<[1], [0], [0], [1], [0, 0, 1, 1], [], []>} : vector<10x20xf32>, vector<20x512xf32>, vector<10x512xf32> -> vector<10x512xf32>
    %c0_34 = arith.constant 0 : index
    %c0_35 = arith.constant 0 : index
    %62 = vector.load %arg15[%c0_34, %c0_35] : memref<10x1xf32, #tpu.memory_space<vmem>>, vector<10x1xf32>
    %63 = vector.broadcast %62 : vector<10x1xf32> to vector<10x512xf32>
    %64 = arith.addf %61, %63 : vector<10x512xf32>
    %65 = math.tanh %64 : vector<10x512xf32>
    %c0_36 = arith.constant 0 : index
    %c0_37 = arith.constant 0 : index
    %66 = vector.load %arg16[%c0_36, %c0_37] : memref<1x10xf32, #tpu.memory_space<vmem>>, vector<1x10xf32>
    %cst_38 = arith.constant dense<0.000000e+00> : vector<1x512xf32>
    %67 = tpu.matmul %66, %65, %cst_38 {dimension_numbers = #tpu.dot_dimension_numbers<[1], [0], [0], [1], [0, 0, 1, 1], [], []>} : vector<1x10xf32>, vector<10x512xf32>, vector<1x512xf32> -> vector<1x512xf32>
    %c0_39 = arith.constant 0 : index
    %c0_40 = arith.constant 0 : index
    %68 = vector.load %arg17[%c0_39, %c0_40] : memref<1x1xf32, #tpu.memory_space<vmem>>, vector<1x1xf32>
    %69 = vector.broadcast %68 : vector<1x1xf32> to vector<1x512xf32>
    %70 = arith.addf %67, %69 : vector<1x512xf32>
    %71 = tpu.concatenate %45, %70 in 0 : vector<1x512xf32>, vector<1x512xf32> -> vector<2x512xf32>
    %c0_41 = arith.constant 0 : index
    %c0_42 = arith.constant 0 : index
    %72 = vector.load %arg18[%c0_41, %c0_42] : memref<2x512xf32, #tpu.memory_space<vmem>>, vector<2x512xf32>
    tpu.vector_store %arg18[%c0_41, %c0_42], %71 {strides = array<i32>} : memref<2x512xf32, #tpu.memory_space<vmem>>, vector<2x512xf32>,
    return
  }
  func.func @transform_0(%arg0: i32) -> (i32, i32) {
    %c0_i32 = arith.constant 0 : i32
    %c0_i32_0 = arith.constant 0 : i32
    return %c0_i32, %arg0 : i32, i32
  }
  func.func @transform_1(%arg0: i32) -> (i32, i32) {
    %c0_i32 = arith.constant 0 : i32
    %c0_i32_0 = arith.constant 0 : i32
    %c0_i32_1 = arith.constant 0 : i32
    return %c0_i32, %c0_i32_0 : i32, i32
  }
  func.func @transform_2(%arg0: i32) -> (i32, i32) {
    %c0_i32 = arith.constant 0 : i32
    %c0_i32_0 = arith.constant 0 : i32
    %c0_i32_1 = arith.constant 0 : i32
    return %c0_i32, %c0_i32_0 : i32, i32
  }
  func.func @transform_3(%arg0: i32) -> (i32, i32) {
    %c0_i32 = arith.constant 0 : i32
    %c0_i32_0 = arith.constant 0 : i32
    %c0_i32_1 = arith.constant 0 : i32
    return %c0_i32, %c0_i32_0 : i32, i32
  }
  func.func @transform_4(%arg0: i32) -> (i32, i32) {
    %c0_i32 = arith.constant 0 : i32
    %c0_i32_0 = arith.constant 0 : i32
    %c0_i32_1 = arith.constant 0 : i32
    return %c0_i32, %c0_i32_0 : i32, i32
  }
  func.func @transform_5(%arg0: i32) -> (i32, i32) {
    %c0_i32 = arith.constant 0 : i32
    %c0_i32_0 = arith.constant 0 : i32
    %c0_i32_1 = arith.constant 0 : i32
    return %c0_i32, %c0_i32_0 : i32, i32
  }
  func.func @transform_6(%arg0: i32) -> (i32, i32) {
    %c0_i32 = arith.constant 0 : i32
    %c0_i32_0 = arith.constant 0 : i32
    %c0_i32_1 = arith.constant 0 : i32
    return %c0_i32, %c0_i32_0 : i32, i32
  }
  func.func @transform_7(%arg0: i32) -> (i32, i32) {
    %c0_i32 = arith.constant 0 : i32
    %c0_i32_0 = arith.constant 0 : i32
    %c0_i32_1 = arith.constant 0 : i32
    return %c0_i32, %c0_i32_0 : i32, i32
  }
  func.func @transform_8(%arg0: i32) -> (i32, i32) {
    %c0_i32 = arith.constant 0 : i32
    %c0_i32_0 = arith.constant 0 : i32
    %c0_i32_1 = arith.constant 0 : i32
    return %c0_i32, %c0_i32_0 : i32, i32
  }
  func.func @transform_9(%arg0: i32) -> (i32, i32) {
    %c0_i32 = arith.constant 0 : i32
    %c0_i32_0 = arith.constant 0 : i32
    %c0_i32_1 = arith.constant 0 : i32
    return %c0_i32, %c0_i32_0 : i32, i32
  }
  func.func @transform_10(%arg0: i32) -> (i32, i32) {
    %c0_i32 = arith.constant 0 : i32
    %c0_i32_0 = arith.constant 0 : i32
    %c0_i32_1 = arith.constant 0 : i32
    return %c0_i32, %c0_i32_0 : i32, i32
  }
  func.func @transform_11(%arg0: i32) -> (i32, i32) {
    %c0_i32 = arith.constant 0 : i32
    %c0_i32_0 = arith.constant 0 : i32
    %c0_i32_1 = arith.constant 0 : i32
    return %c0_i32, %c0_i32_0 : i32, i32
  }
  func.func @transform_12(%arg0: i32) -> (i32, i32) {
    %c0_i32 = arith.constant 0 : i32
    %c0_i32_0 = arith.constant 0 : i32
    %c0_i32_1 = arith.constant 0 : i32
    return %c0_i32, %c0_i32_0 : i32, i32
  }
  func.func @transform_13(%arg0: i32) -> (i32, i32) {
    %c0_i32 = arith.constant 0 : i32
    %c0_i32_0 = arith.constant 0 : i32
    %c0_i32_1 = arith.constant 0 : i32
    return %c0_i32, %c0_i32_0 : i32, i32
  }
  func.func @transform_14(%arg0: i32) -> (i32, i32) {
    %c0_i32 = arith.constant 0 : i32
    %c0_i32_0 = arith.constant 0 : i32
    %c0_i32_1 = arith.constant 0 : i32
    return %c0_i32, %c0_i32_0 : i32, i32
  }
  func.func @transform_15(%arg0: i32) -> (i32, i32) {
    %c0_i32 = arith.constant 0 : i32
    %c0_i32_0 = arith.constant 0 : i32
    %c0_i32_1 = arith.constant 0 : i32
    return %c0_i32, %c0_i32_0 : i32, i32
  }
  func.func @transform_16(%arg0: i32) -> (i32, i32) {
    %c0_i32 = arith.constant 0 : i32
    %c0_i32_0 = arith.constant 0 : i32
    %c0_i32_1 = arith.constant 0 : i32
    return %c0_i32, %c0_i32_0 : i32, i32
  }
  func.func @transform_17(%arg0: i32) -> (i32, i32) {
    %c0_i32 = arith.constant 0 : i32
    %c0_i32_0 = arith.constant 0 : i32
    return %c0_i32, %arg0 : i32, i32
  }
}

</mosaic_0001>

<bundles_post_ra>
// kernel: tpu_custom_call.1
= control target key start
LH: loop header
LB: loop body
LE: loop exit
PB: predicated region body
PF: predicated region fallthrough
CT: control target
= control target key end

     0   :  { %s3016_s0 = inlined_call_operand.vmem [shape: f32[2,1024], index: 0, kind: input, shape index: {}]   ;;  %s3017_s1 = inlined_call_operand.vmem [shape: f32[40,2], index: 1, kind: input, shape index: {}]   ;;  %s3018_s2 = inlined_call_operand.vmem [shape: f32[40,1], index: 2, kind: input, shape index: {}]   ;;  %s3019_s3 = inlined_call_operand.vmem [shape: f32[20,40], index: 3, kind: input, shape index: {}]   ;;  %s3020_s4 = inlined_call_operand.vmem [shape: f32[20,1], index: 4, kind: input, shape index: {}]   ;;  %s3021_s5 = inlined_call_operand.vmem [shape: f32[10,20], index: 5, kind: input, shape index: {}]   ;;  %s3022_s6 = inlined_call_operand.vmem [shape: f32[10,1], index: 6, kind: input, shape index: {}]   ;;  %s3023_s7 = inlined_call_operand.vmem [shape: f32[5,10], index: 7, kind: input, shape index: {}]   ;;  %s3024_s8 = inlined_call_operand.vmem [shape: f32[5,1], index: 8, kind: input, shape index: {}]   ;;  %s3025_s9 = inlined_call_operand.vmem [shape: f32[1,5], index: 9, kind: input, shape index: {}]   ;;  %s3026_s10 = inlined_call_operand.<no memory space> [shape: f32[1,1], index: 10, kind: input, shape index: {}]   ;;  %s3027_s11 = inlined_call_operand.vmem [shape: f32[20,2], index: 11, kind: input, shape index: {}]   ;;  %s3028_s12 = inlined_call_operand.vmem [shape: f32[20,1], index: 12, kind: input, shape index: {}]   ;;  %s3029_s13 = inlined_call_operand.vmem [shape: f32[10,20], index: 13, kind: input, shape index: {}]   ;;  %s3030_s14 = inlined_call_operand.vmem [shape: f32[10,1], index: 14, kind: input, shape index: {}]   ;;  %s3031_s15 = inlined_call_operand.vmem [shape: f32[1,10], index: 15, kind: input, shape index: {}]   ;;  %s3032_s17 = inlined_call_operand.hbm [shape: f32[2,1024], index: 17, kind: output, shape index: {}]   ;;  %s3033_s16 = inlined_call_operand.<no memory space> [shape: f32[1,1], index: 16, kind: input, shape index: {}]  }
   0x1   :  { %3038 = sst [smem:[#allocation10_spill]] %s3016_s0  ;;  %v22_v0 = vstv %s3026_s10  ;;  %v24_v1 = vstv %s3033_s16 }
   0x2   :  { %3039 = sst [smem:[#allocation11_spill]] %s3017_s1  ;;  %23 = vst [vmem:[#allocation2] sm:$0x1] %v22_v0  ;;  %25 = vst [vmem:[#allocation3] sm:$0x1] %v24_v1 }
   0x3   :  { %3040 = sst [smem:[#allocation12_spill]] %s3018_s2 }
   0x4   :  { %26 = vsyncpa [#allocation5], 0 }
   0x5   :  { %28 = vsyncpa [#allocation5 + $0x1], 0  ;;  %s2610_s28 = smov 0   ;;  %s2612_s29 = smov 0  }
   0x6   :  { %s2614_s0 = smov 0   ;;  %s2616_s30 = smov 0  }
   0x7 LB: > { %3041 = sst [smem:[#allocation7_spill]] %s2502_s0  ;;  %s2631_s10 = sadd.s32 4294967295, %s2506_s30   ;;  %s2506_s30 = sphi %s2616_s30, %s3051_s30   ;;  %s2502_s0 = sphi %s2614_s0, %s3053_s0   ;;  %s2498_s29 = sphi %s2612_s29, %s3055_s29   ;;  %s2494_s28 = sphi %s2610_s28, %s3054_s28  }
   0x8   : > { %s2149_s16 = sadd.s32 4294967294, %s2506_s30   ;;  %s2635_s18 = sadd.s32 1, %s2506_s30  }
   0x9   : > { %3042 = sst [smem:[#allocation8_spill]] %s2635_s18  ;;  %s403_s19 = sadd.s32 1, %s2502_s0 }
   0xa   : > { %s400_s1 = ssub.s32 %s2506_s30, %s2635_s18  ;;  %p413_p0 = scmp.ne.s32.totalorder %s2502_s0, %s2498_s29 }
   0xb   : > { %p401_p1 = scmp.eq.s32.totalorder %s400_s1, 0  ;;  %p414_p2 = scmp.eq.s32.totalorder %s2631_s10, 1 }
   0xc   : > { %p419_p3 = scmp.ne.s32.totalorder %s2498_s29, %s2494_s28  ;;  %p420_p4 = scmp.eq.s32.totalorder %s2149_s16, 1 }
   0xd   : > { %s2646_s20 = scalar_select %p401_p1, %s2502_s0, %s403_s19  }
   0xe   : > { %p2648_p5 = por %p414_p2, %p413_p0  ;;  %p2652_p6 = por %p420_p4, %p419_p3 }
   0xf   : > { %3043 = sst [smem:[#allocation9_spill]] %s2646_s20  ;;  %p2152_p7 = scmp.ge.s32.totalorder %s2506_s30, 1 }
  0x10   : > { %p495_p8 = scmp.lt.s32.totalorder %s2506_s30, 3 }
  0x12   : > { %p496_p9 = pnand %p2152_p7, %p495_p8 }
  0x13   : > { %s3046_s25 = sld [smem:[#allocation11_spill]] (!%p496_p9)  ;;  %v2508_v4 = vmov (!%p496_p9), 1   ;;  %v2509_v6 = vmov (!%p496_p9), 0   ;;  %s3047_s2 = sld [smem:[#allocation12_spill]] (!%p496_p9)  ;;  %v812_v14 = vld [vmem:[%s3020_s4 + $0x8] sm:$0xff] (!%p496_p9)  ;;  %v1019_v15 = vld [vmem:[%s3022_s6] sm:$0xff] (!%p496_p9)  ;;  %v586_v25 = vlaneseq (!%p496_p9) }
  0x14   : > { %499 = sbr.rel (%p496_p9) target bundleno = 1398 (0x576), region = 88  ;;  %2304 = vset.pattern.permute.xlu0 (!%p496_p9), %v2508_v4  ;;  %2302 = vset.pattern.permute.xlu1 (!%p496_p9), %v2508_v4  ;;  %v1214_v16 = vld [vmem:[%s3024_s8] sm:$0x1f] (!%p496_p9)  ;;  %v1566_v18 = vld [vmem:[%s3027_s11 + $0x8] sm:$0xff] (!%p496_p9)  ;;  %v813_v19 = vld [vmem:[%s3020_s4 + $0x10] sm:$0xf] (!%p496_p9) }
  0x15   : > { %v811_v17 = vld [vmem:[%s3020_s4] sm:$0xff] (!%p496_p9)  ;;  %v1020_v20 = vld [vmem:[%s3022_s6 + $0x8] sm:$0x3] (!%p496_p9)  ;;  %v2510_v22 = vmov (!%p496_p9), 0.0   ;;  %s2154_s27 = sshll.u32 (!%p496_p9), %s2631_s10, 2  ;;  %v2727_v26 = vshrl.u32 (!%p496_p9), %v586_v25, 7 }
  0x16   : > { %v1565_v21 = vld [vmem:[%s3027_s11] sm:$0xff] (!%p496_p9)  ;;  %903 = vmatprep.mubr.f32.mxu0 (!%p496_p9), %v2510_v22  ;;  %986 = vmatprep.mubr.f32.mxu1 (!%p496_p9), %v2510_v22  ;;  %v1632_v24 = vld [vmem:[%s3028_s12 + $0x8] sm:$0xff] (!%p496_p9)  ;;  %p548_p10 = scmp.lt.s32.totalorder (!%p496_p9), %s2154_s27, 7  ;;  %s3048_s0 = sld [smem:[#allocation10_spill]] (!%p496_p9)  ;;  %vm829_vm0 = vcmask (!%p496_p9), 326656   ;;  %vm1038_vm1 = vcmask (!%p496_p9), 1043456  }
  0x17   : > { %v1631_v23 = vld [vmem:[%s3028_s12] sm:$0xff] (!%p496_p9)  ;;  %v664_v27 = vsub.s32 (!%p496_p9), 1, %v2727_v26  ;;  %v668_v28 = vsub.s32 (!%p496_p9), 3, %v2727_v26  ;;  %v672_v29 = vsub.s32 (!%p496_p9), 5, %v2727_v26  ;;  %v676_v33 = vsub.s32 (!%p496_p9), 7, %v2727_v26  ;;  %s2201_s23 = sshll.u32 (!%p496_p9), %s2631_s10, 7 }
  0x18   : > { %v2737_v34 = vsub.s32 (!%p496_p9), 0, %v2727_v26  ;;  %v592_v35 = vsub.s32 (!%p496_p9), 2, %v2727_v26  ;;  %v596_v36 = vsub.s32 (!%p496_p9), 4, %v2727_v26  ;;  %v600_v39 = vsub.s32 (!%p496_p9), 6, %v2727_v26  ;;  %s2513_s10 = smov (!%p496_p9), [#allocation4]  }
  0x19   : > { %v557_v2 = vld [vmem:[%s3046_s25 + $0x10] sm:$0xff] (!%p496_p9)  ;;  %v555_v3 = vld [vmem:[%s3046_s25] sm:$0xff] (!%p496_p9)  ;;  %v556_v5 = vld [vmem:[%s3046_s25 + $0x8] sm:$0xff] (!%p496_p9)  ;;  %vm1031_vm2 = vcmask (!%p496_p9), 162816   ;;  %vm1224_vm3 = vcmask (!%p496_p9), 1041408   ;;  %vm2511_vm4 = vmmov (!%p496_p9), 1  }
  0x1a   : > { %651 = vperm.xlu0 (!%p496_p9), %2304, %v557_v2   ;;  %643 = vperm.xlu1 (!%p496_p9), %2302, %v555_v3   ;;  %v558_v7 = vld [vmem:[%s3046_s25 + $0x18] sm:$0xff] (!%p496_p9)  ;;  %v739_v8 = vld [vmem:[%s3047_s2 + $0x8] sm:$0xff] (!%p496_p9)  ;;  %v738_v9 = vld [vmem:[%s3047_s2] sm:$0xff] (!%p496_p9)  ;;  %vm1220_vm6 = vcmask (!%p496_p9), 80896   ;;  %vm1410_vm7 = vcmask (!%p496_p9), 1044480   ;;  %vm1406_vm8 = vcmask (!%p496_p9), 39936  }
  0x1b   : > { %v559_v10 = vld [vmem:[%s3046_s25 + $0x20] sm:$0xff]  ;;  %v740_v11 = vld [vmem:[%s3047_s2 + $0x10] sm:$0xff]  ;;  %v741_v13 = vld [vmem:[%s3047_s2 + $0x18] sm:$0xff]  ;;  %s3057_s27 = smov (!%p548_p10, %s2154_s27), 7  ;;  %vm2047_vm9 = vcmask 1040384  }
  0x1c   : > { %v742_v12 = vld [vmem:[%s3047_s2 + $0x20] sm:$0xff]  ;;  %s2155_s16 = sshll.u32 %s3057_s27, 1  ;;  %vm2861_vm5 = vmpackc.low %vm1224_vm3, %vm2511_vm4 }
  0x1d   : > { %s551_s1 = scalar_lea.vmem %s3048_s0, %s2155_s16  ;;  %s544_s0 = sand.u32 1, %s2498_s29  }
  0x1e   : > { %2305 = vset.pattern.permute.xlu0 %v2509_v6  ;;  %647 = vperm.xlu1 %2302, %v556_v5   ;;  %v554_v31 = vld [vmem:[%s551_s1] sm:$0xff]  ;;  %s2153_s1 = sshll.u32 %s544_s0, 3  ;;  %s2972_s16 = scalar_lea.hbm %s3032_s17, %s2201_s23 }
  0x1f   : > { %562 = vperm.xlu0 %2305, %v555_v3   ;;  %v665_v37 = vrot.slane %v554_v31, %v664_v27  ;;  %v669_v38 = vrot.slane %v554_v31, %v668_v28  ;;  %v673_v40 = vrot.slane %v554_v31, %v672_v29  ;;  %v677_v42 = vrot.slane %v554_v31, %v676_v33  ;;  %s546_s24 = scalar_lea.vmem [#allocation4], %s2153_s1  ;;  %s2076_s19 = scalar_lea.sflag [#allocation5], %s544_s0 }
  0x20   : > { %v589_v44 = vrot.slane %v554_v31, %v2737_v34  ;;  %v593_v45 = vrot.slane %v554_v31, %v592_v35  ;;  %v597_v46 = vrot.slane %v554_v31, %v596_v36  ;;  %v601_v49 = vrot.slane %v554_v31, %v600_v39  ;;  %s2090_s18 = sshll.u32 %s546_s24, 4  ;;  %s2448_s1 = sshll.u32 %s2513_s10, 4  ;;  %s2974_s18 = int_to_ptr.vmem [resolvable:$true] %s2090_s18  ;;  %s2449_s1 = int_to_ptr.vmem [resolvable:$false] %s2448_s1 }
  0x21   : > { %v2743_v47 = vrot.slane %v665_v37, %v664_v27  ;;  %v2745_v48 = vrot.slane %v669_v38, %v664_v27  ;;  %v2747_v50 = vrot.slane %v673_v40, %v664_v27  ;;  %v2749_v51 = vrot.slane %v677_v42, %v664_v27  ;;  %s2444_s20 = scalar_lea.vmem %s2974_s18, 128  ;;  %s2450_s2 = scalar_lea.vmem %s2449_s1, 256 }
  0x22   : > { %2303 = vset.pattern.permute.xlu1 %v2509_v6  ;;  %v2752_v52 = vrot.slane %v589_v44, %v2737_v34  ;;  %v2755_v53 = vrot.slane %v593_v45, %v2737_v34  ;;  %v2760_v56 = vrot.slane %v597_v46, %v2737_v34  ;;  %v2765_v59 = vrot.slane %v601_v49, %v2737_v34  ;;  %p2445_p11 = scmp.ne.s32.totalorder %s2974_s18, %s2444_s20  ;;  %p2451_p0 = scmp.lt.s32.totalorder %s2974_s18, %s2449_s1 }
  0x23   : > { %567 = vperm.xlu0 %2305, %v556_v5   ;;  %577 = vperm.xlu1 %2303, %v558_v7   ;;  %p2452_p1 = scmp.lt.s32.totalorder %s2450_s2, %s2444_s20 }
  0x24   : > { %p2446_p12 = pnand %p2445_p11, %p2648_p5 }
  0x25   : > { %p2453_p2 = por %p2452_p1, %p2451_p0 }
  0x26   : > { %p2447_p13 = pneg %p2446_p12 }
  0x27   : > { %572 = vperm.xlu0 %2305, %v557_v2   ;;  %2306 = vset.pattern.permute.xlu1 %v2508_v4 }
  0x28   : > { %655 = vperm.xlu1 %2306, %v558_v7   ;;  %p2454_p3 = pnand %p2453_p2, %p2447_p13 }
  0x2b   : > { %750 = vperm.xlu0 %2305, %v739_v8  }
  0x2c   : > { %2307 = vset.pattern.permute.xlu1 %v2509_v6 }
  0x2d   : > { %745 = vperm.xlu1 %2307, %v738_v9  }
  0x2f   : > { %582 = vperm.xlu0 %2305, %v559_v10  }
  0x31   : > { %755 = vperm.xlu1 %2307, %v740_v11  }
  0x33   : > { %765 = vperm.xlu0 %2305, %v742_v12  }
  0x35   : > { %760 = vperm.xlu1 %2307, %v741_v13  }
  0x37   : > { %821 = vperm.xlu0 %2305, %v812_v14  }
  0x39   : > { %2308 = vset.pattern.permute.xlu1 %v2508_v4 }
  0x3a   : > { %659 = vperm.xlu1 %2308, %v559_v10  }
  0x3b   : > { %1023 = vperm.xlu0 %2305, %v1019_v15  }
  0x3e   : > { %2309 = vset.pattern.permute.xlu1 %v2509_v6 }
  0x3f   : > { %1217 = vperm.xlu0 %2305, %v1214_v16   ;;  %816 = vperm.xlu1 %2309, %v811_v17  }
  0x43   : > { %1575 = vperm.xlu0 %2305, %v1566_v18   ;;  %826 = vperm.xlu1 %2309, %v813_v19  }
  0x47   : > { %2311 = vset.pattern.permute.xlu0 %v2508_v4  ;;  %1028 = vperm.xlu1 %2309, %v1020_v20  }
  0x48   : > { %1600 = vperm.xlu0 %2311, %v1566_v18  }
  0x4b   : > { %1570 = vperm.xlu1 %2309, %v1565_v21  }
  0x4c   : > { %2313 = vset.pattern.permute.xlu0 %v2509_v6 }
  0x4f   : > { %2310 = vset.pattern.permute.xlu1 %v2508_v4 }
  0x50   : > { %1596 = vperm.xlu1 %2310, %v1565_v21  }
  0x54   : > { %2312 = vset.pattern.permute.xlu1 %v2509_v6 }
  0x55   : > { %1636 = vperm.xlu1 %2312, %v1631_v23  }
  0x59   : > { %1641 = vperm.xlu1 %2312, %v1632_v24  }
  0x5d   : > { %2314 = vset.pattern.permute.xlu1 %v2508_v4 }
  0x99   : > { %v644_v30 = vpop.permute.xlu1 %643  ;;  %v652_v32 = vpop.permute.xlu0 %651 }
  0x9a   : > { %v698_v57 = vmul.f32 %v2743_v47, %v644_v30  ;;  %v699_v58 = vmul.f32 %v2745_v48, %v644_v30  ;;  %v700_v60 = vmul.f32 %v2747_v50, %v644_v30  ;;  %v701_v0 = vmul.f32 %v2749_v51, %v644_v30 }
  0x9b   : > { %v706_v5 = vmul.f32 %v2743_v47, %v652_v32  ;;  %v707_v11 = vmul.f32 %v2745_v48, %v652_v32  ;;  %v708_v15 = vmul.f32 %v2747_v50, %v652_v32  ;;  %v709_v19 = vmul.f32 %v2749_v51, %v652_v32 }
  0x9d   : > { %v648_v41 = vpop.permute.xlu1 %647 }
  0x9e   : > { %v563_v43 = vpop.permute.xlu0 %562  ;;  %v702_v7 = vmul.f32 %v2743_v47, %v648_v41  ;;  %v703_v8 = vmul.f32 %v2745_v48, %v648_v41  ;;  %v704_v9 = vmul.f32 %v2747_v50, %v648_v41  ;;  %v705_v12 = vmul.f32 %v2749_v51, %v648_v41 }
  0x9f   : > { %v622_v1 = vmul.f32 %v2752_v52, %v563_v43  ;;  %v623_v2 = vmul.f32 %v2755_v53, %v563_v43  ;;  %v624_v13 = vmul.f32 %v2760_v56, %v563_v43  ;;  %v625_v14 = vmul.f32 %v2765_v59, %v563_v43 }
  0xa1   : > { %v718_v23 = vadd.f32 %v698_v57, %v622_v1  ;;  %v719_v24 = vadd.f32 %v699_v58, %v623_v2  ;;  %v720_v35 = vadd.f32 %v700_v60, %v624_v13  ;;  %v721_v36 = vadd.f32 %v701_v0, %v625_v14 }
  0xa2   : > { %v568_v54 = vpop.permute.xlu0 %567  ;;  %v2757_v55 = vpop.permute.xlu1 %577 }
  0xa3   : > { %v626_v61 = vmul.f32 %v2752_v52, %v568_v54  ;;  %v627_v62 = vmul.f32 %v2755_v53, %v568_v54  ;;  %v628_v63 = vmul.f32 %v2760_v56, %v568_v54  ;;  %v629_v3 = vmul.f32 %v2765_v59, %v568_v54 }
  0xa4   : > { %v634_v37 = vmul.f32 %v2752_v52, %v2757_v55  ;;  %v635_v39 = vmul.f32 %v2755_v53, %v2757_v55  ;;  %v636_v0 = vmul.f32 %v2760_v56, %v2757_v55 }
  0xa5   : > { %v722_v16 = vadd.f32 %v702_v7, %v626_v61  ;;  %v723_v17 = vadd.f32 %v703_v8, %v627_v62  ;;  %v724_v18 = vadd.f32 %v704_v9, %v628_v63  ;;  %v725_v21 = vadd.f32 %v705_v12, %v629_v3 }
  0xa6   : > { %v573_v4 = vpop.permute.xlu0 %572  ;;  %v637_v3 = vmul.f32 %v2765_v59, %v2757_v55 }
  0xa7   : > { %v656_v10 = vpop.permute.xlu1 %655  ;;  %v630_v25 = vmul.f32 %v2752_v52, %v573_v4  ;;  %v631_v30 = vmul.f32 %v2755_v53, %v573_v4  ;;  %v632_v32 = vmul.f32 %v2760_v56, %v573_v4  ;;  %v633_v40 = vmul.f32 %v2765_v59, %v573_v4 }
  0xa8   : > { %v710_v42 = vmul.f32 %v2743_v47, %v656_v10  ;;  %v711_v45 = vmul.f32 %v2745_v48, %v656_v10  ;;  %v712_v57 = vmul.f32 %v2747_v50, %v656_v10  ;;  %v713_v61 = vmul.f32 %v2749_v51, %v656_v10 }
  0xa9   : > { %v726_v44 = vadd.f32 %v706_v5, %v630_v25  ;;  %v727_v54 = vadd.f32 %v707_v11, %v631_v30  ;;  %v728_v58 = vadd.f32 %v708_v15, %v632_v32  ;;  %v729_v62 = vadd.f32 %v709_v19, %v633_v40 }
  0xaa   : > { %v751_v20 = vpop.permute.xlu0 %750  ;;  %v730_v2 = vadd.f32 %v710_v42, %v634_v37  ;;  %v731_v7 = vadd.f32 %v711_v45, %v635_v39  ;;  %v732_v8 = vadd.f32 %v712_v57, %v636_v0  ;;  %v733_v11 = vadd.f32 %v713_v61, %v637_v3 }
  0xab   : > { %v772_v27 = vadd.f32 %v751_v20, %v722_v16  ;;  %v773_v28 = vadd.f32 %v751_v20, %v723_v17  ;;  %v774_v29 = vadd.f32 %v751_v20, %v724_v18  ;;  %v775_v31 = vadd.f32 %v751_v20, %v725_v21 }
  0xac   : > { %v746_v33 = vpop.permute.xlu1 %745 }
  0xad   : > { %2316 = vtanh.f32 %v772_v27  ;;  %v768_v38 = vadd.f32 %v746_v33, %v718_v23  ;;  %v769_v41 = vadd.f32 %v746_v33, %v719_v24  ;;  %v770_v43 = vadd.f32 %v746_v33, %v720_v35 }
  0xae   : > { %2318 = vtanh.f32 %v773_v28  ;;  %v771_v46 = vadd.f32 %v746_v33, %v721_v36  ;;  %v583_v10 = vpop.permute.xlu0 %582 }
  0xaf   : > { %2320 = vtanh.f32 %v774_v29  ;;  %v638_v55 = vmul.f32 %v2752_v52, %v583_v10  ;;  %v639_v18 = vmul.f32 %v2755_v53, %v583_v10  ;;  %v640_v19 = vmul.f32 %v2760_v56, %v583_v10 }
  0xb0   : > { %2322 = vtanh.f32 %v775_v31  ;;  %v756_v49 = vpop.permute.xlu1 %755  ;;  %v641_v28 = vmul.f32 %v2765_v59, %v583_v10  ;;  %v809_v10 = vld [vmem:[%s3019_s3 + $0x8] sm:$0xff] }
  0xb1   : > { %2324 = vtanh.f32 %v768_v38  ;;  %v776_v60 = vadd.f32 %v756_v49, %v726_v44  ;;  %v777_v63 = vadd.f32 %v756_v49, %v727_v54  ;;  %v778_v1 = vadd.f32 %v756_v49, %v728_v58 }
  0xb2   : > { %2326 = vtanh.f32 %v769_v41  ;;  %v779_v4 = vadd.f32 %v756_v49, %v729_v62  ;;  %v766_v37 = vpop.permute.xlu0 %765 }
  0xb3   : > { %2328 = vtanh.f32 %v770_v43 }
  0xb4   : > { %2330 = vtanh.f32 %v771_v46  ;;  %v761_v5 = vpop.permute.xlu1 %760 }
  0xb5   : > { %2332 = vtanh.f32 %v776_v60  ;;  %v780_v9 = vadd.f32 %v761_v5, %v730_v2  ;;  %v781_v12 = vadd.f32 %v761_v5, %v731_v7  ;;  %v782_v14 = vadd.f32 %v761_v5, %v732_v8  ;;  %v808_v7 = vld [vmem:[%s3019_s3] sm:$0xff] }
  0xb6   : > { %2334 = vtanh.f32 %v777_v63  ;;  %v783_v16 = vadd.f32 %v761_v5, %v733_v11  ;;  %v810_v11 = vld [vmem:[%s3019_s3 + $0x10] sm:$0xf] }
  0xb7   : > { %v2317_v13 = vpop.eup %2316  ;;  %2336 = vtanh.f32 %v778_v1 }
  0xb8   : > { %v2319_v15 = vpop.eup %2318  ;;  %2338 = vtanh.f32 %v779_v4 }
  0xb9   : > { %v2321_v17 = vpop.eup %2320  ;;  %2340 = vtanh.f32 %v780_v9  ;;  %v660_v20 = vpop.permute.xlu1 %659 }
  0xba   : > { %v2323_v21 = vpop.eup %2322  ;;  %2342 = vtanh.f32 %v781_v12  ;;  %v714_v23 = vmul.f32 %v2743_v47, %v660_v20  ;;  %v715_v24 = vmul.f32 %v2745_v48, %v660_v20  ;;  %v716_v25 = vmul.f32 %v2747_v50, %v660_v20 }
  0xbb   : > { %v2325_v27 = vpop.eup %2324  ;;  %2344 = vtanh.f32 %v782_v14  ;;  %v717_v29 = vmul.f32 %v2749_v51, %v660_v20 }
  0xbc   : > { %v2327_v30 = vpop.eup %2326  ;;  %2346 = vtanh.f32 %v783_v16  ;;  %v734_v31 = vadd.f32 %v714_v23, %v638_v55  ;;  %v735_v33 = vadd.f32 %v715_v24, %v639_v18  ;;  %v736_v35 = vadd.f32 %v716_v25, %v640_v19  ;;  %v822_v19 = vpop.permute.xlu0 %821 }
  0xbd   : > { %v2329_v36 = vpop.eup %2328  ;;  %v737_v32 = vadd.f32 %v717_v29, %v641_v28  ;;  %v2202_v38 = vpack.c.bf16 %v2319_v15, %v2327_v30  ;;  %v2204_v39 = vpack.c.bf16 %v2317_v13, %v2325_v27 }
  0xbe   : > { %v2331_v40 = vpop.eup %2330  ;;  %v784_v41 = vadd.f32 %v766_v37, %v734_v31  ;;  %v785_v42 = vadd.f32 %v766_v37, %v735_v33  ;;  %v786_v43 = vadd.f32 %v766_v37, %v736_v35  ;;  %v2212_v44 = vpack.c.bf16 %v2321_v17, %v2329_v36  ;;  %v817_v12 = vpop.permute.xlu1 %816 }
  0xbf   : > { %v2333_v45 = vpop.eup %2332  ;;  %v787_v46 = vadd.f32 %v766_v37, %v737_v32  ;;  %2203 = vmatprep.subr.bf16.mxu0 %v2202_v38  ;;  %v2210_v49 = vpack.c.bf16 %v2323_v21, %v2331_v40 }
  0xc0   : > { %v2335_v54 = vpop.eup %2334  ;;  %2348 = vtanh.f32 %v784_v41  ;;  %2205 = vmatpush1.bf16.msra.mxu0 %v2204_v39 }
  0xc1   : > { %v2337_v57 = vpop.eup %2336  ;;  %2350 = vtanh.f32 %v785_v42  ;;  %2211 = vmatprep.subr.bf16.mxu1 %v2210_v49 }
  0xc2   : > { %v2339_v58 = vpop.eup %2338  ;;  %2352 = vtanh.f32 %v786_v43  ;;  %2213 = vmatpush1.bf16.msra.mxu1 %v2212_v44  ;;  %v827_v33 = vpop.permute.xlu1 %826 }
  0xc3   : > { %v2341_v60 = vpop.eup %2340  ;;  %2354 = vtanh.f32 %v787_v46 }
  0xc4   : > { %v2343_v61 = vpop.eup %2342  ;;  %v2208_v62 = vpack.c.bf16 %v2341_v60, %v2333_v45 }
  0xc5   : > { %v2345_v63 = vpop.eup %2344  ;;  %v2206_v0 = vpack.c.bf16 %v2343_v61, %v2335_v54 }
  0xc6   : > { %v2347_v1 = vpop.eup %2346  ;;  %v2216_v2 = vpack.c.bf16 %v2345_v63, %v2337_v57 }
  0xc7   : > { %2207 = vmatprep.subr.bf16.mxu0 %v2206_v0  ;;  %v2214_v3 = vpack.c.bf16 %v2347_v1, %v2339_v58  ;;  %v1017_v0 = vld [vmem:[%s3021_s5] sm:$0xff] }
  0xc8   : > { %2209 = vmatpush1.bf16.msra.mxu0 %v2208_v62 }
  0xc9   : > { %2215 = vmatprep.subr.bf16.mxu1 %v2214_v3  ;;  %v1018_v3 = vld [vmem:[%s3021_s5 + $0x8] sm:$0x3] }
  0xca   : > { %v2349_v4 = vpop.eup %2348  ;;  %2217 = vmatpush1.bf16.msra.mxu1 %v2216_v2 }
  0xcb   : > { %v2351_v5 = vpop.eup %2350 }
  0xcc   : > { %v2353_v8 = vpop.eup %2352  ;;  %847 = vmatprep.subr.mxu0 %v2351_v5  ;;  %v1675_v5 = vld [vmem:[%s3030_s14] sm:$0xff] }
  0xcd   : > { %v2355_v9 = vpop.eup %2354  ;;  %848 = vmatpush1.msra.mxu0 %v2349_v4  ;;  %v1567_v4 = vld [vmem:[%s3027_s11 + $0x10] sm:$0xf] }
  0xce   : > { %930 = vmatprep.subr.mxu1 %v2355_v9  ;;  %2156 = vmatmul.mubr.msk.f32.vlgmr.msra.gmra.mrb[0].mxu0 %vm829_vm0, %v808_v7  ;;  %v1676_v9 = vld [vmem:[%s3030_s14 + $0x8] sm:$0x3] }
  0xcf   : > { %931 = vmatpush1.msra.mxu1 %v2353_v8  ;;  %909 = vmatprep.mubr.f32.mxu0 %v2510_v22  ;;  %v1868_v8 = vld [vmem:[#allocation3] sm:$0x1] }
  0xd0   : > { %2159 = vmatmul.mubr.msk.f32.vlgmr.msra.gmra.mrb[0].mxu1 %vm829_vm0, %v808_v7  ;;  %1604 = vperm.xlu1 %2314, %v1567_v4   ;;  %v1633_v7 = vld [vmem:[%s3028_s12 + $0x10] sm:$0xf] }
  0xd1   : > { %992 = vmatprep.mubr.f32.mxu1 %v2510_v22  ;;  %1580 = vperm.xlu0 %2313, %v1567_v4  }
  0xd2   : > { %2157 = vmatmul.mubr.msk.f32.gmra.mrb[2].mxu0 %vm829_vm0, %v809_v10 }
  0xd3   : > { %915 = vmatprep.mubr.f32.mxu0 %v2510_v22 }
  0xd4   : > { %2160 = vmatmul.mubr.msk.f32.gmra.mrb[2].mxu1 %vm829_vm0, %v809_v10  ;;  %2315 = vset.pattern.permute.xlu1 %v2509_v6  ;;  %v1396_v10 = vld [vmem:[#allocation2] sm:$0x1] }
  0xd5   : > { %998 = vmatprep.mubr.f32.mxu1 %v2510_v22  ;;  %1679 = vperm.xlu0 %2313, %v1675_v5  }
  0xd6   : > { %2158 = vmatmul.mubr.msk.f32.gmra.mrb[4].mxu0 %vm829_vm0, %v810_v11  ;;  %1646 = vperm.xlu1 %2315, %v1633_v7  }
  0xd7   : > { %1115 = vmatprep.mubr.f32.mxu0 %v2510_v22 }
  0xd8   : > { %2161 = vmatmul.mubr.msk.f32.gmra.mrb[4].mxu1 %vm829_vm0, %v810_v11  ;;  %v1024_v11 = vpop.permute.xlu0 %1023 }
  0xd9   : > { %1192 = vmatprep.mubr.f32.mxu1 %v2510_v22  ;;  %1871 = vperm.xlu0 %2313, %v1868_v8  }
  0xda   : > { %1684 = vperm.xlu1 %2315, %v1676_v9  }
  0xde   : > { %1399 = vperm.xlu1 %2315, %v1396_v10  }
 0x1a1   : > { %v905_v13 = vpop.f32.mrb[0].mxu0 }
 0x1a2   : > { %v906_v14 = vadd.f32 %v905_v13, %v817_v12  ;;  %v907_v15 = vpop.f32.mrb[1].mxu0 }
 0x1a3   : > { %v988_v16 = vpop.f32.mrb[0].mxu1  ;;  %v908_v17 = vadd.f32 %v907_v15, %v817_v12 }
 0x1a4   : > { %2356 = vtanh.f32 %v906_v14  ;;  %v989_v55 = vadd.f32 %v988_v16, %v817_v12  ;;  %v990_v18 = vpop.f32.mrb[1].mxu1 }
 0x1a5   : > { %2358 = vtanh.f32 %v908_v17  ;;  %v991_v20 = vadd.f32 %v990_v18, %v817_v12  ;;  %v911_v21 = vpop.f32.mrb[2].mxu0 }
 0x1a6   : > { %2360 = vtanh.f32 %v989_v55  ;;  %v912_v23 = vadd.f32 %v911_v21, %v822_v19  ;;  %v913_v24 = vpop.f32.mrb[3].mxu0  ;;  %v1029_v55 = vpop.permute.xlu1 %1028 }
 0x1a7   : > { %2362 = vtanh.f32 %v991_v20  ;;  %v994_v25 = vpop.f32.mrb[2].mxu1  ;;  %v914_v27 = vadd.f32 %v913_v24, %v822_v19 }
 0x1a8   : > { %2364 = vtanh.f32 %v912_v23  ;;  %v995_v28 = vadd.f32 %v994_v25, %v822_v19  ;;  %v996_v29 = vpop.f32.mrb[3].mxu1 }
 0x1a9   : > { %2366 = vtanh.f32 %v914_v27  ;;  %v997_v30 = vadd.f32 %v996_v29, %v822_v19  ;;  %v917_v31 = vpop.f32.mrb[4].mxu0 }
 0x1aa   : > { %2368 = vtanh.f32 %v995_v28  ;;  %v919_v35 = vpop.f32.mrb[5].mxu0  ;;  %v918_v32 = vadd.f32 %v917_v31, %v827_v33 }
 0x1ab   : > { %2370 = vtanh.f32 %v997_v30  ;;  %v1000_v36 = vpop.f32.mrb[4].mxu1  ;;  %v920_v37 = vadd.f32 %v919_v35, %v827_v33 }
 0x1ac   : > { %v1002_v38 = vpop.f32.mrb[5].mxu1  ;;  %v1001_v41 = vadd.f32 %v1000_v36, %v827_v33 }
 0x1ad   : > { %2372 = vtanh.f32 %v920_v37  ;;  %v1003_v39 = vadd.f32 %v1002_v38, %v827_v33 }
 0x1ae   : > { %v2357_v40 = vpop.eup %2356 }
 0x1af   : > { %v2359_v42 = vpop.eup %2358  ;;  %2374 = vtanh.f32 %v1003_v39 }
 0x1b0   : > { %v2361_v43 = vpop.eup %2360  ;;  %2376 = vtanh.f32 %v918_v32 }
 0x1b1   : > { %v2363_v44 = vpop.eup %2362  ;;  %2378 = vtanh.f32 %v1001_v41 }
 0x1b2   : > { %v2365_v45 = vpop.eup %2364 }
 0x1b3   : > { %v2367_v46 = vpop.eup %2366  ;;  %v2220_v49 = vpack.c.bf16 %v2365_v45, %v2357_v40  ;;  %v1218_v45 = vpop.permute.xlu0 %1217 }
 0x1b4   : > { %v2369_v54 = vpop.eup %2368  ;;  %v2218_v57 = vpack.c.bf16 %v2367_v46, %v2359_v42 }
 0x1b5   : > { %v2371_v58 = vpop.eup %2370  ;;  %v2224_v60 = vpack.c.bf16 %v2369_v54, %v2361_v43  ;;  %v1213_v43 = vld [vmem:[%s3023_s7] sm:$0x1f] }
 0x1b6   : > { %2219 = vmatprep.subr.bf16.mxu0 %v2218_v57  ;;  %v2222_v61 = vpack.c.bf16 %v2371_v58, %v2363_v44  ;;  %v1571_v44 = vpop.permute.xlu1 %1570 }
 0x1b7   : > { %v2373_v62 = vpop.eup %2372  ;;  %2221 = vmatpush1.bf16.msra.mxu0 %v2220_v49  ;;  %v1576_v49 = vpop.permute.xlu0 %1575  ;;  %v1583_v54 = vmul.f32 %v1571_v44, %v2752_v52  ;;  %v1584_v58 = vmul.f32 %v1571_v44, %v2755_v53 }
 0x1b8   : > { %2223 = vmatprep.subr.bf16.mxu1 %v2222_v61  ;;  %2162 = vmatprep.subr.msk.mxu0 %vm1038_vm1, %v2373_v62  ;;  %v1585_v61 = vmul.f32 %v1571_v44, %v2760_v56  ;;  %v1587_v10 = vmul.f32 %v1576_v49, %v2752_v52 }
 0x1b9   : > { %v2375_v63 = vpop.eup %2374  ;;  %2225 = vmatpush1.bf16.msra.mxu1 %v2224_v60 }
 0x1ba   : > { %v2377_v1 = vpop.eup %2376  ;;  %2166 = vmatprep.subr.msk.mxu1 %vm1038_vm1, %v2375_v63  ;;  %v1597_v46 = vpop.permute.xlu1 %1596 }
 0x1bb   : > { %2163 = vmatpush1.msk.msra.mxu0 %vm1038_vm1, %v2377_v1  ;;  %v2379_v2 = vpop.eup %2378  ;;  %v1607_v57 = vmul.f32 %v1597_v46, %v2743_v47  ;;  %v1608_v60 = vmul.f32 %v1597_v46, %v2745_v48  ;;  %v1609_v62 = vmul.f32 %v1597_v46, %v2747_v50  ;;  %v1586_v1 = vmul.f32 %v1571_v44, %v2765_v59 }
 0x1bc   : > { %2164 = vmatmul.mubr.msk.f32.vlgmr.msra.gmra.mrb[6].mxu0 %vm1031_vm2, %v1017_v0 }
 0x1bd   : > { %2167 = vmatpush1.msk.msra.mxu1 %vm1038_vm1, %v2379_v2  ;;  %1121 = vmatprep.mubr.f32.mxu0 %v2510_v22  ;;  %v1610_v2 = vmul.f32 %v1597_v46, %v2749_v51  ;;  %v1620_v4 = vadd.f32 %v1608_v60, %v1584_v58  ;;  %v1621_v7 = vadd.f32 %v1609_v62, %v1585_v61 }
 0x1be   : > { %2168 = vmatmul.mubr.msk.f32.vlgmr.msra.gmra.mrb[6].mxu1 %vm1031_vm2, %v1017_v0  ;;  %v1637_v63 = vpop.permute.xlu1 %1636  ;;  %v1601_v0 = vpop.permute.xlu0 %1600 }
 0x1bf   : > { %1198 = vmatprep.mubr.f32.mxu1 %v2510_v22  ;;  %v1611_v5 = vmul.f32 %v1601_v0, %v2743_v47  ;;  %v1612_v8 = vmul.f32 %v1601_v0, %v2745_v48  ;;  %v1622_v9 = vadd.f32 %v1610_v2, %v1586_v1 }
 0x1c0   : > { %2165 = vmatmul.mubr.msk.f32.gmra.mrb[8].mxu0 %vm1031_vm2, %v1018_v3 }
 0x1c1   : > { %1301 = vmatprep.mubr.f32.mxu0 %v2510_v22 }
 0x1c2   : > { %2169 = vmatmul.mubr.msk.f32.gmra.mrb[8].mxu1 %vm1031_vm2, %v1018_v3  ;;  %v1619_v3 = vadd.f32 %v1607_v57, %v1583_v54 }
 0x1c3   : > { %1372 = vmatprep.mubr.f32.mxu1 %v2510_v22 }
 0x28f   : > { %v1117_v12 = vpop.f32.mrb[6].mxu0 }
 0x290   : > { %v1118_v13 = vadd.f32 %v1117_v12, %v1024_v11  ;;  %v1119_v14 = vpop.f32.mrb[7].mxu0  ;;  %v1614_v12 = vmul.f32 %v1601_v0, %v2749_v51 }
 0x291   : > { %v1194_v15 = vpop.f32.mrb[6].mxu1  ;;  %v1120_v16 = vadd.f32 %v1119_v14, %v1024_v11  ;;  %v1642_v14 = vpop.permute.xlu1 %1641 }
 0x292   : > { %2380 = vtanh.f32 %v1118_v13  ;;  %v1195_v17 = vadd.f32 %v1194_v15, %v1024_v11  ;;  %v1196_v6 = vpop.f32.mrb[7].mxu1  ;;  %v1649_v13 = vadd.f32 %v1637_v63, %v1619_v3  ;;  %v1588_v15 = vmul.f32 %v1576_v49, %v2755_v53 }
 0x293   : > { %2382 = vtanh.f32 %v1120_v16  ;;  %v1197_v18 = vadd.f32 %v1196_v6, %v1024_v11  ;;  %v1123_v19 = vpop.f32.mrb[8].mxu0  ;;  %v1613_v11 = vmul.f32 %v1601_v0, %v2747_v50  ;;  %v1650_v16 = vadd.f32 %v1637_v63, %v1620_v4 }
 0x294   : > { %2384 = vtanh.f32 %v1195_v17  ;;  %v1124_v20 = vadd.f32 %v1123_v19, %v1029_v55  ;;  %v1125_v21 = vpop.f32.mrb[9].mxu0  ;;  %v1589_v17 = vmul.f32 %v1576_v49, %v2760_v56  ;;  %v1590_v6 = vmul.f32 %v1576_v49, %v2765_v59 }
 0x295   : > { %2386 = vtanh.f32 %v1197_v18  ;;  %v1200_v23 = vpop.f32.mrb[8].mxu1  ;;  %v1126_v24 = vadd.f32 %v1125_v21, %v1029_v55  ;;  %v1623_v18 = vadd.f32 %v1611_v5, %v1587_v10  ;;  %v1652_v19 = vadd.f32 %v1637_v63, %v1622_v9  ;;  %v1581_v21 = vpop.permute.xlu0 %1580 }
 0x296   : > { %2388 = vtanh.f32 %v1124_v20  ;;  %v1201_v25 = vadd.f32 %v1200_v23, %v1029_v55  ;;  %v1202_v27 = vpop.f32.mrb[9].mxu1  ;;  %v1624_v20 = vadd.f32 %v1612_v8, %v1588_v15  ;;  %v1625_v23 = vadd.f32 %v1613_v11, %v1589_v17  ;;  %v1395_v17 = vld [vmem:[%s3025_s9] sm:$0x1] }
 0x297   : > { %2390 = vtanh.f32 %v1126_v24  ;;  %v1203_v28 = vadd.f32 %v1202_v27, %v1029_v55  ;;  %v1651_v55 = vadd.f32 %v1637_v63, %v1621_v7  ;;  %v1626_v24 = vadd.f32 %v1614_v12, %v1590_v6 }
 0x298   : > { %2392 = vtanh.f32 %v1201_v25  ;;  %v1653_v25 = vadd.f32 %v1642_v14, %v1623_v18  ;;  %v1593_v58 = vmul.f32 %v1581_v21, %v2760_v56 }
 0x299   : > { %2394 = vtanh.f32 %v1203_v28  ;;  %v1605_v28 = vpop.permute.xlu1 %1604 }
 0x29a   : > { %2396 = vtanh.f32 %v1649_v13  ;;  %v1617_v60 = vmul.f32 %v1605_v28, %v2747_v50 }
 0x29b   : > { %2398 = vtanh.f32 %v1650_v16 }
 0x29c   : > { %v2381_v29 = vpop.eup %2380  ;;  %2400 = vtanh.f32 %v1651_v55  ;;  %v1629_v1 = vadd.f32 %v1617_v60, %v1593_v58 }
 0x29d   : > { %v2383_v30 = vpop.eup %2382  ;;  %2402 = vtanh.f32 %v1652_v19  ;;  %v1647_v61 = vpop.permute.xlu1 %1646 }
 0x29e   : > { %v2385_v31 = vpop.eup %2384  ;;  %2404 = vtanh.f32 %v1653_v25  ;;  %v1659_v5 = vadd.f32 %v1647_v61, %v1629_v1 }
 0x29f   : > { %v2387_v33 = vpop.eup %2386 }
 0x2a0   : > { %v2389_v35 = vpop.eup %2388 }
 0x2a1   : > { %v2391_v36 = vpop.eup %2390  ;;  %v2229_v32 = vpack.c.bf16 %v2389_v35, %v2381_v29 }
 0x2a2   : > { %v2393_v38 = vpop.eup %2392  ;;  %v2226_v39 = vpack.c.bf16 %v2391_v36, %v2383_v30 }
 0x2a3   : > { %v2395_v40 = vpop.eup %2394  ;;  %v2235_v41 = vpack.c.bf16 %v2393_v38, %v2385_v31  ;;  %v1592_v31 = vmul.f32 %v1581_v21, %v2755_v53  ;;  %v1618_v38 = vmul.f32 %v1605_v28, %v2749_v51  ;;  %v1655_v51 = vadd.f32 %v1642_v14, %v1625_v23 }
 0x2a4   : > { %2228 = vmatprep.subr.msk.bf16.mxu0 %vm2861_vm5, %v2226_v39  ;;  %v2232_v42 = vpack.c.bf16 %v2395_v40, %v2387_v33  ;;  %v1616_v33 = vmul.f32 %v1605_v28, %v2745_v48  ;;  %v1654_v39 = vadd.f32 %v1642_v14, %v1624_v20  ;;  %v1591_v48 = vmul.f32 %v1581_v21, %v2752_v52  ;;  %v2397_v62 = vpop.eup %2396 }
 0x2a5   : > { %2231 = vmatpush1.bf16.msk.msra.mxu0 %vm2861_vm5, %v2229_v32  ;;  %v1594_v32 = vmul.f32 %v1581_v21, %v2765_v59  ;;  %v1615_v59 = vmul.f32 %v1605_v28, %v2743_v47  ;;  %v2399_v0 = vpop.eup %2398  ;;  %v1673_v28 = vld [vmem:[%s3029_s13] sm:$0xff] }
 0x2a6   : > { %2234 = vmatprep.subr.msk.bf16.mxu1 %vm2861_vm5, %v2232_v42  ;;  %v1628_v49 = vadd.f32 %v1616_v33, %v1592_v31  ;;  %v2401_v2 = vpop.eup %2400 }
 0x2a7   : > { %2237 = vmatpush1.bf16.msk.msra.mxu1 %vm2861_vm5, %v2235_v41  ;;  %v1630_v57 = vadd.f32 %v1618_v38, %v1594_v32  ;;  %v1627_v63 = vadd.f32 %v1615_v59, %v1591_v48  ;;  %v2403_v47 = vpop.eup %2402  ;;  %v1680_v32 = vpop.permute.xlu0 %1679 }
 0x2a8   : > { %2172 = vmatmul.mubr.msk.f32.vlgmr.msra.gmra.mrb[10].mxu0 %vm1220_vm6, %v1213_v43  ;;  %v2405_v3 = vpop.eup %2404 }
 0x2a9   : > { %1487 = vmatprep.mubr.f32.mxu0 %v2510_v22  ;;  %v1660_v52 = vadd.f32 %v1647_v61, %v1630_v57  ;;  %v1657_v4 = vadd.f32 %v1647_v61, %v1627_v63 }
 0x2aa   : > { %2175 = vmatmul.mubr.msk.f32.vlgmr.msra.gmra.mrb[10].mxu1 %vm1220_vm6, %v1213_v43  ;;  %v1656_v43 = vadd.f32 %v1642_v14, %v1626_v24  ;;  %v2240_v24 = vpack.c.bf16 %v2405_v3, %v2397_v62 }
 0x2ab   : > { %1558 = vmatprep.mubr.f32.mxu1 %v2510_v22 }
 0x37b   : > { %v1303_v27 = vpop.f32.mrb[10].mxu0 }
 0x37c   : > { %v1304_v29 = vadd.f32 %v1303_v27, %v1218_v45  ;;  %v1305_v30 = vpop.f32.mrb[11].mxu0 }
 0x37d   : > { %v1374_v35 = vpop.f32.mrb[10].mxu1  ;;  %v1306_v36 = vadd.f32 %v1305_v30, %v1218_v45  ;;  %v1674_v30 = vld [vmem:[%s3029_s13 + $0x8] sm:$0x3] }
 0x37e   : > { %v1379_v40 = vmul.f32 0.5, %v1304_v29  ;;  %v1375_v41 = vadd.f32 %v1374_v35, %v1218_v45  ;;  %v1376_v42 = vpop.f32.mrb[11].mxu1 }
 0x37f   : > { %v1380_v44 = vmul.f32 0.5, %v1306_v36  ;;  %v1377_v46 = vadd.f32 %v1376_v42, %v1218_v45  ;;  %v1658_v45 = vadd.f32 %v1647_v61, %v1628_v49 }
 0x380   : > { %2406 = vtanh.f32 %v1379_v40  ;;  %v1381_v53 = vmul.f32 0.5, %v1375_v41 }
 0x381   : > { %2408 = vtanh.f32 %v1380_v44  ;;  %v1382_v54 = vmul.f32 0.5, %v1377_v46 }
 0x382   : > { %2410 = vtanh.f32 %v1381_v53  ;;  %v1685_v53 = vpop.permute.xlu1 %1684 }
 0x383   : > { %2412 = vtanh.f32 %v1382_v54 }
 0x384   : > { %2414 = vtanh.f32 %v1654_v39 }
 0x385   : > { %2416 = vtanh.f32 %v1656_v43 }
 0x386   : > { %2418 = vtanh.f32 %v1655_v51 }
 0x387   : > { %2420 = vtanh.f32 %v1658_v45 }
 0x388   : > { %2422 = vtanh.f32 %v1660_v52 }
 0x389   : > { %2424 = vtanh.f32 %v1657_v4 }
 0x38a   : > { %v2407_v56 = vpop.eup %2406  ;;  %2426 = vtanh.f32 %v1659_v5  ;;  %v1872_v5 = vpop.permute.xlu0 %1871 }
 0x38b   : > { %v2409_v50 = vpop.eup %2408  ;;  %v1387_v7 = vadd.f32 1.0, %v2407_v56  ;;  %v1867_v56 = vld [vmem:[%s3031_s15] sm:$0x1] }
 0x38c   : > { %v2411_v8 = vpop.eup %2410  ;;  %v1388_v9 = vadd.f32 1.0, %v2409_v50  ;;  %v2512_v50 = vmov 1983009808  }
 0x38d   : > { %v2413_v10 = vpop.eup %2412  ;;  %v1389_v11 = vadd.f32 1.0, %v2411_v8  ;;  %v1391_v16 = vmul.f32 0.5, %v1387_v7  ;;  %v2059_v7 = vunpack.c.l.s4 %v2512_v50  ;;  %v1400_v8 = vpop.permute.xlu1 %1399 }
 0x38e   : > { %v2415_v12 = vpop.eup %2414  ;;  %v1392_v13 = vmul.f32 0.5, %v1388_v9  ;;  %v1390_v14 = vadd.f32 1.0, %v2413_v10  ;;  %v1877_v9 = vrot.slane %v1872_v5, %v2737_v34 }
 0x38f   : > { %v2417_v15 = vpop.eup %2416  ;;  %v1393_v18 = vmul.f32 0.5, %v1389_v11  ;;  %v2238_v19 = vpack.c.bf16 %v2415_v12, %v2399_v0  ;;  %v1405_v11 = vrot.slane %v1400_v8, %v2737_v34  ;;  %v2060_v37 = vunpack.c.0.s8 %v2059_v7 }
 0x390   : > { %v2419_v6 = vpop.eup %2418  ;;  %v1394_v55 = vmul.f32 0.5, %v1390_v14  ;;  %2176 = vmatprep.subr.msk.mxu0 %vm1410_vm7, %v1392_v13  ;;  %v2242_v21 = vpack.c.bf16 %v2417_v15, %v2403_v47 }
 0x391   : > { %2177 = vmatpush1.msk.msra.mxu0 %vm1410_vm7, %v1391_v16  ;;  %v2421_v20 = vpop.eup %2420  ;;  %v2244_v25 = vpack.c.bf16 %v2419_v6, %v2401_v2 }
 0x392   : > { %2179 = vmatprep.subr.msk.mxu1 %vm1410_vm7, %v1394_v55  ;;  %2178 = vmatmul.mubr.msk.f32.vlgmr.msra.gmra.mrb[12].mxu0 %vm1406_vm8, %v1395_v17  ;;  %v2423_v23 = vpop.eup %2422 }
 0x393   : > { %2180 = vmatpush1.msk.msra.mxu1 %vm1410_vm7, %v1393_v18  ;;  %2239 = vmatprep.subr.bf16.mxu0 %v2238_v19  ;;  %v2425_v27 = vpop.eup %2424 }
 0x394   : > { %2181 = vmatmul.mubr.msk.f32.vlgmr.msra.gmra.mrb[12].mxu1 %vm1406_vm8, %v1395_v17  ;;  %2243 = vmatprep.subr.bf16.mxu1 %v2242_v21  ;;  %v2427_v29 = vpop.eup %2426 }
 0x395   : > { %2241 = vmatpush1.bf16.msra.mxu0 %v2240_v24  ;;  %2245 = vmatpush1.bf16.msra.mxu1 %v2244_v25 }
 0x396   : > { %2182 = vmatprep.subr.msk.mxu0 %vm1038_vm1, %v2421_v20  ;;  %2186 = vmatprep.subr.msk.mxu1 %vm1038_vm1, %v2423_v23 }
 0x397   : > { %1769 = vmatprep.mubr.f32.mxu0 %v2510_v22  ;;  %1846 = vmatprep.mubr.f32.mxu1 %v2510_v22 }
 0x399   : > { %2183 = vmatpush1.msk.msra.mxu0 %vm1038_vm1, %v2425_v27  ;;  %2187 = vmatpush1.msk.msra.mxu1 %vm1038_vm1, %v2427_v29  ;;  %v2063_v27 = vsub.s32 %v2060_v37, %v2727_v26 }
 0x39a   : > { %2184 = vmatmul.mubr.msk.f32.vlgmr.msra.gmra.mrb[14].mxu0 %vm1031_vm2, %v1673_v28  ;;  %2188 = vmatmul.mubr.msk.f32.vlgmr.msra.gmra.mrb[14].mxu1 %vm1031_vm2, %v1673_v28 }
 0x39b   : > { %1775 = vmatprep.mubr.f32.mxu0 %v2510_v22  ;;  %1852 = vmatprep.mubr.f32.mxu1 %v2510_v22 }
 0x39e   : > { %2185 = vmatmul.mubr.msk.f32.gmra.mrb[16].mxu0 %vm1031_vm2, %v1674_v30  ;;  %2189 = vmatmul.mubr.msk.f32.gmra.mrb[16].mxu1 %vm1031_vm2, %v1674_v30 }
 0x39f   : > { %1957 = vmatprep.mubr.f32.mxu0 %v2510_v22  ;;  %2028 = vmatprep.mubr.f32.mxu1 %v2510_v22 }
 0x465   : > { %v2933_v31 = vpop.f32.mrb[12].mxu0 }
 0x466   : > { %v2935_v33 = vpop.f32.mrb[13].mxu0  ;;  %v1490_v6 = vadd.f32 %v2933_v31, %v1405_v11 }
 0x467   : > { %v2937_v35 = vpop.f32.mrb[12].mxu1  ;;  %v1492_v20 = vadd.f32 %v2935_v33, %v1405_v11 }
 0x468   : > { %v2939_v36 = vpop.f32.mrb[13].mxu1  ;;  %v1561_v19 = vadd.f32 %v2937_v35, %v1405_v11 }
 0x469   : > { %v1563_v23 = vadd.f32 %v2939_v36, %v1405_v11 }
 0x46d   : > { %v1771_v38 = vpop.f32.mrb[14].mxu0  ;;  %v1848_v39 = vpop.f32.mrb[14].mxu1 }
 0x46e   : > { %v1772_v40 = vadd.f32 %v1771_v38, %v1680_v32  ;;  %v1849_v41 = vadd.f32 %v1848_v39, %v1680_v32  ;;  %v1773_v42 = vpop.f32.mrb[15].mxu0  ;;  %v1850_v43 = vpop.f32.mrb[15].mxu1 }
 0x46f   : > { %v1774_v44 = vadd.f32 %v1773_v42, %v1680_v32  ;;  %v1851_v46 = vadd.f32 %v1850_v43, %v1680_v32 }
 0x470   : > { %2428 = vtanh.f32 %v1772_v40 }
 0x471   : > { %2430 = vtanh.f32 %v1849_v41  ;;  %v1777_v22 = vpop.f32.mrb[16].mxu0  ;;  %v1854_v48 = vpop.f32.mrb[16].mxu1 }
 0x472   : > { %2432 = vtanh.f32 %v1774_v44  ;;  %v1778_v49 = vadd.f32 %v1777_v22, %v1685_v53  ;;  %v1855_v54 = vadd.f32 %v1854_v48, %v1685_v53  ;;  %v1779_v59 = vpop.f32.mrb[17].mxu0  ;;  %v1856_v57 = vpop.f32.mrb[17].mxu1 }
 0x473   : > { %2434 = vtanh.f32 %v1851_v46  ;;  %v1780_v51 = vadd.f32 %v1779_v59, %v1685_v53  ;;  %v1857_v58 = vadd.f32 %v1856_v57, %v1685_v53 }
 0x474   : > { %2436 = vtanh.f32 %v1778_v49 }
 0x475   : > { %2438 = vtanh.f32 %v1855_v54 }
 0x476   : > { %2440 = vtanh.f32 %v1780_v51 }
 0x477   : > { %2442 = vtanh.f32 %v1857_v58 }
 0x47a   : > { %v2429_v60 = vpop.eup %2428 }
 0x47b   : > { %v2431_v61 = vpop.eup %2430 }
 0x47c   : > { %v2433_v45 = vpop.eup %2432 }
 0x47d   : > { %v2435_v62 = vpop.eup %2434 }
 0x47e   : > { %v2437_v63 = vpop.eup %2436 }
 0x47f   : > { %v2439_v52 = vpop.eup %2438  ;;  %v2249_v0 = vpack.c.bf16 %v2437_v63, %v2429_v60 }
 0x480   : > { %v2441_v1 = vpop.eup %2440  ;;  %v2255_v2 = vpack.c.bf16 %v2439_v52, %v2431_v61 }
 0x481   : > { %v2443_v47 = vpop.eup %2442  ;;  %v2246_v3 = vpack.c.bf16 %v2441_v1, %v2433_v45 }
 0x482   : > { %v2252_v4 = vpack.c.bf16 %v2443_v47, %v2435_v62 }
 0x483   : > { %2248 = vmatprep.subr.msk.bf16.mxu0 %vm2861_vm5, %v2246_v3 }
 0x484   : > { %2254 = vmatprep.subr.msk.bf16.mxu1 %vm2861_vm5, %v2252_v4  ;;  %2251 = vmatpush1.bf16.msk.msra.mxu0 %vm2861_vm5, %v2249_v0 }
 0x485   : > { %2257 = vmatpush1.bf16.msk.msra.mxu1 %vm2861_vm5, %v2255_v2 }
 0x487   : > { %2192 = vmatmul.mubr.msk.f32.vlgmr.msra.gmra.mrb[18].mxu0 %vm1220_vm6, %v1867_v56 }
 0x488   : > { %2195 = vmatmul.mubr.msk.f32.vlgmr.msra.gmra.mrb[18].mxu1 %vm1220_vm6, %v1867_v56 }
 0x55a   : > { %v1959_v10 = vpop.f32.mrb[18].mxu0 }
 0x55b   : > { %v1960_v12 = vadd.f32 %v1959_v10, %v1877_v9  ;;  %v2030_v13 = vpop.f32.mrb[18].mxu1  ;;  %v1961_v14 = vpop.f32.mrb[19].mxu0 }
 0x55c   : > { %v2031_v15 = vadd.f32 %v2030_v13, %v1877_v9  ;;  %v1962_v16 = vadd.f32 %v1961_v14, %v1877_v9  ;;  %v2032_v17 = vpop.f32.mrb[19].mxu1 }
 0x55d   : > { %v2039_v55 = vrot.slane %v1960_v12, 7  ;;  %v2033_v18 = vadd.f32 %v2032_v17, %v1877_v9 }
 0x55e   : > { %v2041_v34 = vrot.slane %v2031_v15, 7  ;;  %v2040_v21 = vrot.slane %v1962_v16, 7 }
 0x55f   : > { %v2048_v24 = vsel %vm2047_vm9, %v1490_v6, %v2039_v55  ;;  %v2042_v25 = vrot.slane %v2033_v18, 7 }
 0x560   : > { %v2050_v28 = vsel %vm2047_vm9, %v1561_v19, %v2041_v34  ;;  %v2049_v29 = vsel %vm2047_vm9, %v1492_v20, %v2040_v21 }
 0x561   : > { %v2056_v30 = vcombine.low %v2048_v24, %v2049_v29  ;;  %v2051_v31 = vsel %vm2047_vm9, %v1563_v23, %v2042_v25 }
 0x562   : > { %v2057_v35 = vcombine.low %v2050_v28, %v2051_v31 }
 0x563   : > { %v2064_v33 = vrot.slane %v2056_v30, %v2063_v27 }
 0x564   : > { %v2071_v36 = vrot.slane %v2057_v35, %v2063_v27 }
 0x566   : > { %v2072_v32 = vcombine.low %v2064_v33, %v2071_v36 }
 0x568   : > { %2074 = vst [vmem:[%s546_s24] sm:$0xff] %v2072_v32 }
 0x569   : > { %2457 = shalt.err (!%p2454_p3)
}
 0x56a   : > { %s2458_s0 = scalar_lea.hbm %s2972_s16, 128  ;;  %s2462_s26 = scalar_lea.hbm %s3032_s17, 256 }
 0x56b   : > { %p2459_p4 = scmp.ne.s32.totalorder %s2972_s16, %s2458_s0  ;;  %p2463_p9 = scmp.lt.u32.totalorder %s2972_s16, %s3032_s17 }
 0x56c   : > { %p2464_p10 = scmp.lt.u32.totalorder %s2462_s26, %s2458_s0  ;;  %p2466_p12 = scmp.lt.u32.totalorder %s2458_s0, %s2972_s16 }
 0x56d   : > { %p2460_p7 = pnand %p2459_p4, %p2648_p5 }
 0x56e   : > { %p2465_p11 = por %p2464_p10, %p2463_p9 }
 0x56f   : > { %p2461_p8 = pneg %p2460_p7 }
 0x570   : > { %p2467_p13 = por %p2466_p12, %p2465_p11 }
 0x572   : > { %p2468_p0 = pnand %p2467_p13, %p2461_p8 }
 0x574   : > { %2471 = shalt.err (!%p2468_p0)
}
 0x575   : > { %2258 = dma.vmem_to_hbm [thread:$0]  (%p2648_p5), %s2974_s18, 128, %s2972_s16, %s2076_s19  }
 0x576 PF: > { %p2264_p1 = scmp.ge.s32.totalorder %s2506_s30, 2  ;;  %s2102_s2 = sand.u32 1, %s2494_s28  }
 0x577   : > { %s2103_s20 = scalar_lea.sflag [#allocation5], %s2102_s2 }
 0x578   : > { %p2261_p2 = pnand %p2264_p1, %p2652_p6 }
 0x57a   : > { %2489 = dma.done.wait (!%p2261_p2), %s2103_s20, 128  }
 0x57b   : > { %2491 = vsyncadd (!%p2261_p2), %s2103_s20, 4294967168  ;;  %s3051_s30 = sld [smem:[#allocation8_spill]]  ;;  %s3052_s1 = sld [smem:[#allocation7_spill]] }
 0x57c   : > { %s3053_s0 = sld [smem:[#allocation9_spill]]  ;;  %s3054_s28 = smov %s2498_s29 }
 0x581   : > { %p31_p3 = scmp.ge.s32.totalorder %s3051_s30, 4   ;;  %s3055_s29 = smov %s3052_s1 }
 0x583   :  { %33 = sbr.rel (!%p31_p3) target bundleno = 7 (0x7), region = 123 }
 0x58a   :  { %2108 = vsyncpa [#allocation5], 1 }
 0x58b   :  { %2110 = vsyncpa [#allocation5 + $0x1], 1 }

</bundles_post_ra>
